<compile_context>
chip_gen: v7x
topology: tpu7x:2x2x1
jax: 0.10.0
libtpu: 0.0.40
codegen_flags: <defaults>
</compile_context>

<pallas_src>
import jax
import jax.numpy as jnp
from jax.experimental import pallas as pl
from jax.experimental.pallas import tpu as pltpu


def _pick_tile(spatial, num_classes, itemsize,
               target_block_bytes=4 << 20, vmem_budget_bytes=44 << 20):
    """Lane-dim tile: multiple of 128, ~target_block_bytes of logits per block, capped so
    the estimated VMEM working set (double-buffered inputs + in-kernel f32 temporaries,
    with sublane padding) stays inside vmem_budget_bytes (safe on v7x's 64 MiB VMEM)."""
    if spatial <= 128:
        return spatial                                   # block == full dim, always legal
    c_pad = -(-num_classes // 8) * 8                     # class axis pads to 8 sublanes
    # Bytes of VMEM per lane column: 2x double-buffered (logits + targets) blocks, both
    # sublane-padded, plus ~4 live full-block f32 temporaries inside the kernel.
    per_lane = 2 * (c_pad * itemsize + 8 * 4) + 4 * (c_pad * 4)
    t_target = (target_block_bytes // (num_classes * itemsize)) // 128 * 128
    t_budget = (vmem_budget_bytes // per_lane) // 128 * 128
    t = max(128, min(t_target, t_budget))
    return min(t, (spatial // 128) * 128)


def _make_dice_kernel(num_valid_cols, tile, needs_mask):
    """Per-block kernel: softmax over classes (sublane axis), one-hot targets, write the
    intersection partial sum for this block. union is analytic (handled in the wrapper)."""

    def kernel(logits_ref, tgt_ref, inter_ref):
        # logits_ref: (1, C, TILE) original dtype; tgt_ref: (1, 1, TILE) integer dtype.
        x = logits_ref[0].astype(jnp.float32)            # (C, TILE) — cast in-kernel
        tgt = tgt_ref[0].astype(jnp.int32)               # (1, TILE)
        C, T = x.shape

        # One-hot targets via class iota along sublanes.
        # TODO(synk): out-of-range / ignore-index target ids become an all-zero one-hot
        # row here (PyTorch F.one_hot would raise); the analytic union = 2*B*H*W in the
        # wrapper also assumes every target id is in [0, C).
        cls = jax.lax.broadcasted_iota(jnp.int32, (C, T), 0)
        onehot = (cls == tgt).astype(jnp.float32)        # (C, TILE)

        def block_intersection(xv, oh):
            # Numerically stable softmax over the class (sublane) axis; only the
            # intersection sum_c(softmax * onehot) is needed, so reduce over classes
            # first and multiply by the per-column reciprocal once.
            x_max = jnp.max(xv, axis=0, keepdims=True)                     # (1, T)
            e = jnp.exp(xv - x_max)                                        # (C, T)
            inv = pl.reciprocal(jnp.sum(e, axis=0, keepdims=True),
                                approx=False)                              # (1, T)
            numer = jnp.sum(e * oh, axis=0, keepdims=True)                 # (1, T)
            return jnp.sum(numer * inv, axis=(0, 1),
                           keepdims=True).reshape(1, 1, 1, 1)

        if needs_mask:
            j = pl.program_id(1)
            last = pl.num_programs(1) - 1

            @pl.when(j != last)
            def _():
                inter_ref[...] = block_intersection(x, onehot)

            @pl.when(j == last)
            def _():
                col = j * tile + jax.lax.broadcasted_iota(jnp.int32, (1, T), 1)
                valid = col < num_valid_cols                               # (1, T)
                xm = jnp.where(valid, x, 0.0)        # keep exp finite on OOB garbage
                oh = jnp.where(valid, onehot, 0.0)   # zero padded columns' contribution
                inter_ref[...] = block_intersection(xm, oh)
        else:
            inter_ref[...] = block_intersection(x, onehot)

    return kernel


def dice_loss(logits, targets, eps=1e-6, target_block_bytes=4 << 20):
    """Dice loss matching PyTorch DiceLoss.forward (3-D integer-target path). Jittable."""
    B, C, H, W = logits.shape
    S = H * W

    # Free views only: no transpose, no HBM dtype up-cast of the logits.
    logits_3d = logits.reshape(B, C, S)
    # Stream targets in their native dtype when it is a <=32-bit integer type
    # (avoids a separate full-tensor cast pass in HBM); cast on the VMEM tile.
    if jnp.issubdtype(targets.dtype, jnp.integer) and jnp.dtype(targets.dtype).itemsize <= 4:
        tgt_3d = targets.reshape(B, 1, S)
    else:
        tgt_3d = targets.reshape(B, 1, S).astype(jnp.int32)

    itemsize = jnp.dtype(logits.dtype).itemsize
    tile = _pick_tile(S, C, itemsize, target_block_bytes)
    num_tiles = -(-S // tile)
    needs_mask = (S % tile) != 0

    # VMEM limit from the same working-set estimate used to cap the tile (with the
    # class axis padded to 8 sublanes). Clamped to [32 MiB, 56 MiB] — always below
    # v7x's 64 MiB physical VMEM, comfortably inside v5e/v6e's 128 MiB.
    c_pad = -(-C // 8) * 8
    vmem_est = 2 * (c_pad * tile * itemsize + 8 * tile * 4) + 4 * (c_pad * tile * 4)
    vmem_limit = int(min(56 << 20, max(32 << 20, vmem_est)))

    kernel = _make_dice_kernel(S, tile, needs_mask)

    part_shape = jax.ShapeDtypeStruct((B, num_tiles, 1, 1), jnp.float32)
    part_spec = pl.BlockSpec((1, 1, 1, 1), lambda b, j: (b, j, 0, 0))

    inter_p = pl.pallas_call(
        kernel,
        out_shape=part_shape,
        grid=(B, num_tiles),
        in_specs=[
            pl.BlockSpec((1, C, tile), lambda b, j: (b, 0, j)),
            pl.BlockSpec((1, 1, tile), lambda b, j: (b, 0, j)),
        ],
        out_specs=part_spec,
        compiler_params=pltpu.CompilerParams(
            dimension_semantics=("parallel", "parallel"),
            vmem_limit_bytes=vmem_limit,
        ),
    )(logits_3d, tgt_3d)

    intersection = jnp.sum(inter_p)
    # sum(softmax) == B*S and sum(onehot) == B*S for in-range targets, so the union is
    # known analytically; this removes two full-block reductions + two outputs per step.
    union = jnp.float32(2.0 * B * S)
    dice = (2.0 * intersection + eps) / (union + eps)
    loss = 1.0 - dice
    # TODO(synk): PyTorch returns loss.item() in the dict (host sync); we keep the JAX
    # scalar so the function stays jittable — callers may float() after block_until_ready.
    loss_dict = {"DICE": loss}
    return loss, loss_dict


def _dice_loss_ref(logits, targets, eps=1e-6):
    """Pure-JAX reference mirroring the PyTorch code."""
    pred = jax.nn.softmax(logits.astype(jnp.float32), axis=1)
    num_classes = pred.shape[1]
    onehot = jax.nn.one_hot(targets, num_classes, dtype=jnp.float32)   # (B,H,W,C)
    onehot = jnp.transpose(onehot, (0, 3, 1, 2))                       # (B,C,H,W)
    iflat = pred.reshape(-1)
    tflat = onehot.reshape(-1)
    intersection = jnp.sum(iflat * tflat)
    union = jnp.sum(pred) + jnp.sum(onehot)
    dice = (2.0 * intersection + eps) / (union + eps)
    return 1.0 - dice


if __name__ == "__main__":
    key = jax.random.PRNGKey(0)
    k1, k2, k3, k4 = jax.random.split(key, 4)

    # Case 1: canonical small shape — single full tile (unmasked fast path).
    B, C, H, W = 2, 4, 16, 16
    logits = jax.random.normal(k1, (B, C, H, W), dtype=jnp.float32)
    targets = jax.random.randint(k2, (B, H, W), 0, C, dtype=jnp.int32)

    loss, loss_dict = jax.jit(dice_loss)(logits, targets)
    loss = jax.block_until_ready(loss)
    ref = jax.block_until_ready(_dice_loss_ref(logits, targets))
    assert jnp.allclose(loss, ref, atol=1e-5, rtol=1e-5), (loss, ref)
    assert jnp.allclose(loss_dict["DICE"], ref, atol=1e-5, rtol=1e-5)

    # Case 2: spatial size not a multiple of the tile — exercises the pl.when-gated
    # masked last block (S = 400, tile = 384, 2 spatial blocks).
    B2, C2, H2, W2 = 2, 4, 20, 20
    logits2 = jax.random.normal(k3, (B2, C2, H2, W2), dtype=jnp.float32)
    targets2 = jax.random.randint(k4, (B2, H2, W2), 0, C2, dtype=jnp.int32)

    loss2, _ = jax.jit(dice_loss)(logits2, targets2)
    loss2 = jax.block_until_ready(loss2)
    ref2 = jax.block_until_ready(_dice_loss_ref(logits2, targets2))
    assert jnp.allclose(loss2, ref2, atol=1e-5, rtol=1e-5), (loss2, ref2)

    print("KERNEL_OK")
</pallas_src>

<mosaic_0001>
module attributes {stable_mosaic.version = 11 : i64} {
  func.func @kernel(%arg0: i32, %arg1: i32, %arg2: memref<1x4x256xf32, #tpu.memory_space<vmem>>, %arg3: memref<1x1x256xi32, #tpu.memory_space<vmem>>, %arg4: memref<1x1x1x1xf32, #tpu.memory_space<vmem>>) attributes {dimension_semantics = [#tpu.dimension_semantics<parallel>, #tpu.dimension_semantics<parallel>], iteration_bounds = array<i64: 2, 1>, scalar_prefetch = 0 : i64, scratch_operands = 0 : i64, tpu.core_type = #tpu.core_type<tc>, window_params = [{transform_indices = @transform_0, window_bounds = array<i64: 1, 4, 256>}, {transform_indices = @transform_1, window_bounds = array<i64: 1, 1, 256>}, {transform_indices = @transform_2, window_bounds = array<i64: 1, 1, 1, 1>}]} {
    %c0 = arith.constant 0 : index
    %c0_0 = arith.constant 0 : index
    %c0_1 = arith.constant 0 : index
    %0 = vector.load %arg2[%c0, %c0_0, %c0_1] : memref<1x4x256xf32, #tpu.memory_space<vmem>>, vector<1x4x256xf32>
    %1 = vector.shape_cast %0 : vector<1x4x256xf32> to vector<4x256xf32>
    %c0_2 = arith.constant 0 : index
    %c0_3 = arith.constant 0 : index
    %c0_4 = arith.constant 0 : index
    %2 = vector.load %arg3[%c0_2, %c0_3, %c0_4] : memref<1x1x256xi32, #tpu.memory_space<vmem>>, vector<1x1x256xi32>
    %3 = vector.shape_cast %2 : vector<1x1x256xi32> to vector<1x256xi32>
    %4 = tpu.iota {dimensions = array<i32: 0>} : vector<4x256xi32>
    %5 = vector.broadcast %3 : vector<1x256xi32> to vector<4x256xi32>
    %6 = arith.cmpi eq, %4, %5 : vector<4x256xi32>
    %7 = arith.extui %6 : vector<4x256xi1> to vector<4x256xi32>
    %8 = arith.sitofp %7 : vector<4x256xi32> to vector<4x256xf32>
    %cst = arith.constant dense<0xFF800000> : vector<256xf32>
    %9 = vector.multi_reduction <maximumf>, %1, %cst [0] : vector<4x256xf32> to vector<256xf32>
    %10 = vector.shape_cast %9 : vector<256xf32> to vector<1x256xf32>
    %11 = vector.broadcast %10 : vector<1x256xf32> to vector<4x256xf32>
    %12 = arith.subf %1, %11 : vector<4x256xf32>
    %13 = math.exp %12 : vector<4x256xf32>
    %cst_5 = arith.constant dense<0.000000e+00> : vector<256xf32>
    %14 = vector.multi_reduction <add>, %13, %cst_5 [0] : vector<4x256xf32> to vector<256xf32>
    %15 = vector.shape_cast %14 : vector<256xf32> to vector<1x256xf32>
    %16 = tpu.reciprocal %15 : vector<1x256xf32> -> vector<1x256xf32>
    %17 = arith.mulf %13, %8 : vector<4x256xf32>
    %cst_6 = arith.constant dense<0.000000e+00> : vector<256xf32>
    %18 = vector.multi_reduction <add>, %17, %cst_6 [0] : vector<4x256xf32> to vector<256xf32>
    %19 = vector.shape_cast %18 : vector<256xf32> to vector<1x256xf32>
    %20 = arith.mulf %19, %16 : vector<1x256xf32>
    %21 = vector.shape_cast %20 : vector<1x256xf32> to vector<1x1x256xf32>
    %cst_7 = arith.constant dense<0.000000e+00> : vector<1xf32>
    %22 = vector.multi_reduction <add>, %21, %cst_7 [1, 2] : vector<1x1x256xf32> to vector<1xf32>
    %23 = vector.shape_cast %22 : vector<1xf32> to vector<1x1x1xf32>
    %24 = vector.extract %23[0, 0, 0] : f32 from vector<1x1x1xf32>
    %25 = vector.broadcast %24 : f32 to vector<1x1xf32>
    %26 = vector.shape_cast %25 : vector<1x1xf32> to vector<1x1x1x1xf32>
    %c0_8 = arith.constant 0 : index
    %c0_9 = arith.constant 0 : index
    %c0_10 = arith.constant 0 : index
    %c0_11 = arith.constant 0 : index
    %27 = vector.load %arg4[%c0_8, %c0_9, %c0_10, %c0_11] : memref<1x1x1x1xf32, #tpu.memory_space<vmem>>, vector<1x1x1x1xf32>
    tpu.vector_store %arg4[%c0_8, %c0_9, %c0_10, %c0_11], %26 {strides = array<i32>} : memref<1x1x1x1xf32, #tpu.memory_space<vmem>>, vector<1x1x1x1xf32>,
    return
  }
  func.func @transform_0(%arg0: i32, %arg1: i32) -> (i32, i32, i32) {
    %c0_i32 = arith.constant 0 : i32
    %c0_i32_0 = arith.constant 0 : i32
    return %arg0, %c0_i32, %arg1 : i32, i32, i32
  }
  func.func @transform_1(%arg0: i32, %arg1: i32) -> (i32, i32, i32) {
    %c0_i32 = arith.constant 0 : i32
    %c0_i32_0 = arith.constant 0 : i32
    return %arg0, %c0_i32, %arg1 : i32, i32, i32
  }
  func.func @transform_2(%arg0: i32, %arg1: i32) -> (i32, i32, i32, i32) {
    %c0_i32 = arith.constant 0 : i32
    %c0_i32_0 = arith.constant 0 : i32
    %c0_i32_1 = arith.constant 0 : i32
    return %arg0, %arg1, %c0_i32, %c0_i32_0 : i32, i32, i32, i32
  }
}

</mosaic_0001>

<bundles_post_ra>
// kernel: dice_loss.1
= control target key start
LH: loop header
LB: loop body
LE: loop exit
PB: predicated region body
PF: predicated region fallthrough
CT: control target
= control target key end

     0   :  { %s484_s9 = smov 0   ;;  %s486_s10 = smov 0   ;;  %s531_s0 = inlined_call_operand.vmem [shape: f32[2,4,256], index: 0, kind: input, shape index: {}]   ;;  %s532_s1 = inlined_call_operand.vmem [shape: s32[2,1,256], index: 1, kind: input, shape index: {}]   ;;  %s533_s2 = inlined_call_operand.vmem [shape: f32[2,1,1,1], index: 2, kind: output, shape index: {}]  }
   0x1   :  { %s488_s11 = smov 0  }
   0x2 LB: > { %s24_s12 = sadd.s32 1, %s462_s10  ;;  %p401_p0 = scmp.ge.s32.totalorder %s466_s11, 1  ;;  %s466_s11 = sphi %s488_s11, %s12_s11   ;;  %s462_s10 = sphi %s486_s10, %s535_s10   ;;  %s458_s9 = sphi %s484_s9, %s534_s9  }
   0x3   : > { %p26_p1 = scmp.ge.s32.totalorder %s24_s12, 2  ;;  %p149_p2 = scmp.lt.s32.totalorder %s466_s11, 3 }
   0x5   : > { %s537_s12 = smov (%p26_p1, %s24_s12), 0  ;;  %p150_p3 = pnand %p401_p0, %p149_p2 }
   0x6   : > { %p185_p4 = scmp.lt.s32.totalorder (!%p150_p3), %s458_s9, 1  ;;  %vm230_vm0 = vcmask (!%p150_p3), 1043456   ;;  %v211_v9 = vlaneseq (!%p150_p3)  ;;  %v468_v26 = vmov (!%p150_p3), 0.0   ;;  %vm295_vm3 = vcmask (!%p150_p3), 1040384  }
   0x7   : > { %153 = sbr.rel (%p150_p3) target bundleno = 287 (0x11f), region = 28  ;;  %vm309_vm4 = vcmask (!%p150_p3), 0  }
   0x8   : > { %v212_v14 = vshrl.u32 (!%p150_p3), %v211_v9, 7 }
   0xa   : > { %v215_v18 = vsub.s32 (!%p150_p3), 0, %v212_v14  ;;  %v219_v19 = vsub.s32 (!%p150_p3), 1, %v212_v14 }
   0xe   : > { %s539_s9 = smov (!%p185_p4, %s458_s9), 1 }
   0xf   : > { %s409_s13 = sshll.u32 %s539_s9, 3  ;;  %s404_s17 = sshll.u32 %s539_s9, 1 }
  0x10   : > { %s192_s16 = scalar_lea.vmem %s531_s0, %s409_s13  ;;  %s201_s20 = scalar_lea.vmem %s532_s1, %s404_s17 }
  0x11   : > { %v209_v0 = vld [vmem:[%s192_s16] sm:$0xff]  ;;  %s208_s23 = scalar_lea.vmem %s533_s2, %s539_s9 }
  0x12   : > { %v228_v1 = vcombine.high %v209_v0, %v209_v0  ;;  %v231_v2 = vsel %vm230_vm0, %v209_v0, -inf  ;;  %v210_v20 = vld [vmem:[%s201_s20] sm:$0x3] }
  0x13   : > { %v232_v3 = vrot.slane %v231_v2, 4  ;;  %v216_v23 = vrot.slane %v210_v20, %v215_v18  ;;  %v220_v24 = vrot.slane %v210_v20, %v219_v19 }
  0x14   : > { %v238_v4 = vsel %vm230_vm0, %v228_v1, -inf }
  0x15   : > { %v233_v5 = vmax.f32 %v231_v2, %v232_v3  ;;  %v239_v6 = vrot.slane %v238_v4, 4  ;;  %vm221_vm1 = vcmp.eq.s32.totalorder %v212_v14, %v216_v23  ;;  %vm222_vm2 = vcmp.eq.s32.totalorder %v212_v14, %v220_v24 }
  0x16   : > { %v405_v27 = vsel %vm221_vm1, 1.0, %v468_v26  ;;  %v406_v28 = vsel %vm222_vm2, 1.0, %v468_v26 }
  0x17   : > { %v234_v7 = vrot.slane %v233_v5, 2  ;;  %v240_v8 = vmax.f32 %v238_v4, %v239_v6  ;;  %v273_v29 = vcombine.low %v405_v27, %v406_v28 }
  0x19   : > { %v235_v10 = vmax.f32 %v233_v5, %v234_v7  ;;  %v241_v11 = vrot.slane %v240_v8, 2 }
  0x1b   : > { %v236_v12 = vrot.slane %v235_v10, 1  ;;  %v242_v13 = vmax.f32 %v240_v8, %v241_v11 }
  0x1d   : > { %v237_v15 = vmax.f32 %v235_v10, %v236_v12  ;;  %v243_v16 = vrot.slane %v242_v13, 1 }
  0x1f   : > { %v244_v17 = vmax.f32 %v242_v13, %v243_v16 }
  0x21   : > { %v247_v21 = vcombine.low %v237_v15, %v244_v17 }
  0x23   : > { %v249_v22 = vsub.f32 %v209_v0, %v247_v21 }
  0x25   : > { %v250_v25 = vmul.f32 1.442695, %v249_v22 }
  0x27   : > { %438 = vpow2.f32 %v250_v25 }
  0x31   : > { %v439_v30 = vpop.eup %438 }
  0x32   : > { %v253_v31 = vcombine.high %v439_v30, %v439_v30  ;;  %v255_v32 = vsel %vm230_vm0, %v439_v30, 0.0  ;;  %v275_v33 = vmul.f32 %v439_v30, %v273_v29 }
  0x33   : > { %v256_v34 = vrot.slane %v255_v32, 4 }
  0x34   : > { %v262_v35 = vsel %vm230_vm0, %v253_v31, 0.0  ;;  %v277_v36 = vcombine.high %v275_v33, %v275_v33  ;;  %v279_v37 = vsel %vm230_vm0, %v275_v33, 0.0 }
  0x35   : > { %v257_v38 = vadd.f32 %v256_v34, %v255_v32  ;;  %v263_v39 = vrot.slane %v262_v35, 4  ;;  %v280_v40 = vrot.slane %v279_v37, 4 }
  0x36   : > { %v286_v41 = vsel %vm230_vm0, %v277_v36, 0.0 }
  0x37   : > { %v258_v42 = vrot.slane %v257_v38, 2  ;;  %v264_v43 = vadd.f32 %v263_v39, %v262_v35  ;;  %v281_v44 = vadd.f32 %v280_v40, %v279_v37  ;;  %v287_v45 = vrot.slane %v286_v41, 4 }
  0x39   : > { %v259_v46 = vadd.f32 %v258_v42, %v257_v38  ;;  %v265_v47 = vrot.slane %v264_v43, 2  ;;  %v288_v48 = vadd.f32 %v287_v45, %v286_v41  ;;  %v282_v49 = vrot.slane %v281_v44, 2 }
  0x3b   : > { %v260_v50 = vrot.slane %v259_v46, 1  ;;  %v266_v51 = vadd.f32 %v265_v47, %v264_v43  ;;  %v289_v52 = vrot.slane %v288_v48, 2  ;;  %v283_v55 = vadd.f32 %v282_v49, %v281_v44 }
  0x3d   : > { %v261_v53 = vadd.f32 %v260_v50, %v259_v46  ;;  %v267_v54 = vrot.slane %v266_v51, 1  ;;  %v290_v57 = vadd.f32 %v289_v52, %v288_v48  ;;  %v284_v58 = vrot.slane %v283_v55, 1 }
  0x3f   : > { %v268_v56 = vadd.f32 %v267_v54, %v266_v51  ;;  %440 = vrcp.f32 %v261_v53  ;;  %v291_v59 = vrot.slane %v290_v57, 1  ;;  %v285_v60 = vadd.f32 %v284_v58, %v283_v55 }
  0x41   : > { %442 = vrcp.f32 %v268_v56  ;;  %v292_v61 = vadd.f32 %v291_v59, %v290_v57 }
  0x49   : > { %v441_v62 = vpop.eup %440 }
  0x4a   : > { %v293_v63 = vmul.f32 %v441_v62, %v285_v60 }
  0x4b   : > { %v443_v0 = vpop.eup %442 }
  0x4c   : > { %v294_v1 = vmul.f32 %v443_v0, %v292_v61  ;;  %v296_v2 = vsel %vm295_vm3, %v293_v63, 0.0 }
  0x4e   : > { %v297_v3 = vsel %vm295_vm3, %v294_v1, 0.0 }
  0x4f   : > { %v298_v4 = vadd.f32 %v297_v3, %v296_v2 }
  0x51   : > { %299 = vadd.xlane.f32.xlu0 %v298_v4 }
  0xde   : > { %v300_v5 = vpop.xlane.xlu0 %299 }
  0xdf   : > { %v301_v6 = vrot.slane %v300_v5, 4 }
  0xe1   : > { %v302_v7 = vadd.f32 %v301_v6, %v300_v5 }
  0xe3   : > { %v303_v8 = vrot.slane %v302_v7, 2 }
  0xe5   : > { %v304_v9 = vadd.f32 %v303_v8, %v302_v7 }
  0xe7   : > { %v305_v10 = vrot.slane %v304_v9, 1 }
  0xe9   : > { %v306_v11 = vadd.f32 %v305_v10, %v304_v9 }
  0xeb   : > { %410 = vpush %v306_v11 }
 0x11c   : > { %s411_s24 = spop %410 }
 0x11d   : > { %v308_v12 = vstv %s411_s24 }
 0x11e   : > { %310 = vst.msk [vmem:[%s208_s23] sm:$0x1] %vm309_vm4, %v308_v12 }
 0x11f PF: > { %s12_s11 = sadd.s32 1, %s466_s11   ;;  %s534_s9 = smov %s462_s10 }
 0x120   : > { %p9_p5 = scmp.ge.s32.totalorder %s12_s11, 4   ;;  %s535_s10 = smov %s537_s12 }
 0x122   :  { %11 = sbr.rel (!%p9_p5) target bundleno = 2 (0x2), region = 61 }

</bundles_post_ra>
